<compile_context>
chip_gen: v7x
topology: tpu7x:2x2x1
jax: 0.10.0
libtpu: 0.0.40
codegen_flags: <defaults>
</compile_context>

<pallas_src>
import functools

import jax
import jax.numpy as jnp
from jax.experimental import pallas as pl
from jax.experimental.pallas import tpu as pltpu


def _pairwise_ranking_kernel(a_ref, p_ref, n_ref, o_ref, *,
                             margin, batch, block_b, needs_mask):
    i = pl.program_id(0)

    # Upcast before the subtraction (bf16 cancellation safety), then fuse the
    # two dot products:  p_prod - n_prod == sum(a * (p - n), dim=1).
    a = a_ref[...].astype(jnp.float32)
    p = p_ref[...].astype(jnp.float32)
    n = n_ref[...].astype(jnp.float32)

    d = jnp.sum(a * (p - n), axis=1, keepdims=True)        # (TB, 1) f32
    hinge = jnp.maximum(margin - d, 0.0)                    # (TB, 1) f32

    if needs_mask:
        last = pl.num_programs(0) - 1

        @pl.when(i == last)
        def _masked_tail():
            # Only the last block can contain rows past the true batch size.
            row = jax.lax.broadcasted_iota(jnp.int32, hinge.shape, 0) + i * block_b
            masked = jnp.where(row < batch, hinge, 0.0)
            o_ref[0] = jnp.sum(masked, keepdims=True)       # (1, 1)

        @pl.when(i != last)
        def _body():
            o_ref[0] = jnp.sum(hinge, keepdims=True)        # (1, 1)
    else:
        o_ref[0] = jnp.sum(hinge, keepdims=True)            # (1, 1)


def _vmem_budgets():
    """Generation-aware (input-buffer budget, vmem_limit_bytes)."""
    try:
        cap = int(pltpu.get_tpu_info().vmem_capacity_bytes)
    except Exception:
        cap = 64 * 1024 * 1024  # conservative fallback: assume v7x-sized VMEM
    if cap >= 128 * 1024 * 1024:                  # v5e / v6e
        return 88 * 1024 * 1024, 104 * 1024 * 1024
    return 44 * 1024 * 1024, 56 * 1024 * 1024    # v7x (64 MiB physical)


def pairwise_ranking_loss(anchor, positive, negative, margin, *,
                          block_b=None, min_kernel_bytes=0):
    """Pallas TPU implementation of PairwiseRankingLoss.forward."""
    assert anchor.shape == positive.shape == negative.shape
    assert anchor.ndim == 2
    B, D = anchor.shape
    itemsize = anchor.dtype.itemsize

    # At tiny sizes a fused XLA elementwise+reduce beats kernel launch overhead;
    # callers can pass e.g. min_kernel_bytes=1<<20 to enable that fallback.
    if 3 * B * D * itemsize < min_kernel_bytes:
        return pairwise_ranking_loss_ref(anchor, positive, negative, margin)

    budget, vmem_limit = _vmem_budgets()

    if block_b is None:
        # 3 inputs x 2 pipeline buffers x TB x D x itemsize <= budget.
        tb = budget // (6 * D * itemsize)
        tb = max(8, min(16384, (tb // 8) * 8))
        block_b = tb
    block_b = min(block_b, B)
    if block_b != B:
        # When actually tiling, the sublane block dim must be a multiple of 8.
        block_b = max(8, (block_b // 8) * 8)
        if block_b >= B:
            block_b = B

    num_blocks = pl.cdiv(B, block_b)
    needs_mask = (B % block_b) != 0

    kernel = functools.partial(
        _pairwise_ranking_kernel,
        margin=float(margin), batch=B, block_b=block_b, needs_mask=needs_mask,
    )

    partials = pl.pallas_call(
        kernel,
        out_shape=jax.ShapeDtypeStruct((num_blocks, 1, 1), jnp.float32),
        grid_spec=pltpu.PrefetchScalarGridSpec(
            num_scalar_prefetch=0,
            grid=(num_blocks,),
            in_specs=[
                pl.BlockSpec((block_b, D), lambda i: (i, 0)),
                pl.BlockSpec((block_b, D), lambda i: (i, 0)),
                pl.BlockSpec((block_b, D), lambda i: (i, 0)),
            ],
            out_specs=pl.BlockSpec((1, 1, 1), lambda i: (i, 0, 0)),
        ),
        compiler_params=pltpu.CompilerParams(
            dimension_semantics=("parallel",),  # no carried state -> megacore OK
            vmem_limit_bytes=vmem_limit,
        ),
        cost_estimate=pl.CostEstimate(
            flops=4 * B * D,
            transcendentals=0,
            bytes_accessed=3 * B * D * itemsize + num_blocks * 4,
        ),
    )(anchor, positive, negative)

    # Tiny final reduction of the per-block partial sums in the wrapper.
    return jnp.sum(partials) * (1.0 / float(B))


def pairwise_ranking_loss_ref(anchor, positive, negative, margin):
    """Pure-JAX reference mirroring the PyTorch module."""
    p_product = jnp.sum(anchor * positive, axis=1)
    n_product = jnp.sum(anchor * negative, axis=1)
    dist_hinge = jnp.maximum(margin - p_product + n_product, 0.0)
    return jnp.mean(dist_hinge)


if __name__ == "__main__":
    margin = 0.2

    # Case 1: small embedding-style inputs, single block (full-array tile).
    k_a, k_p, k_n = jax.random.split(jax.random.PRNGKey(0), 3)
    B, D = 8, 32
    anchor = jax.random.normal(k_a, (B, D), dtype=jnp.float32)
    positive = jax.random.normal(k_p, (B, D), dtype=jnp.float32)
    negative = jax.random.normal(k_n, (B, D), dtype=jnp.float32)

    loss = jax.block_until_ready(
        pairwise_ranking_loss(anchor, positive, negative, margin))
    ref = pairwise_ranking_loss_ref(anchor, positive, negative, margin)
    assert jnp.allclose(loss, ref, rtol=1e-5, atol=1e-5), (loss, ref)

    # Case 2: force small batch tiles (block_b=8) with B not a multiple of the
    # tile -> exercises the parallel partial sums and the padded-row masking.
    k_a2, k_p2, k_n2 = jax.random.split(jax.random.PRNGKey(1), 3)
    B2, D2 = 20, 128
    anchor2 = jax.random.normal(k_a2, (B2, D2), dtype=jnp.float32)
    positive2 = jax.random.normal(k_p2, (B2, D2), dtype=jnp.float32)
    negative2 = jax.random.normal(k_n2, (B2, D2), dtype=jnp.float32)

    loss2 = jax.block_until_ready(
        pairwise_ranking_loss(anchor2, positive2, negative2, margin, block_b=8))
    ref2 = pairwise_ranking_loss_ref(anchor2, positive2, negative2, margin)
    assert jnp.allclose(loss2, ref2, rtol=1e-5, atol=1e-5), (loss2, ref2)

    # Case 3: bf16 inputs, exercising the upcast-before-subtract path.
    k_a3, k_p3, k_n3 = jax.random.split(jax.random.PRNGKey(2), 3)
    B3, D3 = 16, 256
    anchor3 = jax.random.normal(k_a3, (B3, D3), dtype=jnp.bfloat16)
    positive3 = jax.random.normal(k_p3, (B3, D3), dtype=jnp.bfloat16)
    negative3 = jax.random.normal(k_n3, (B3, D3), dtype=jnp.bfloat16)

    loss3 = jax.block_until_ready(
        pairwise_ranking_loss(anchor3, positive3, negative3, margin))
    ref3 = pairwise_ranking_loss_ref(
        anchor3.astype(jnp.float32), positive3.astype(jnp.float32),
        negative3.astype(jnp.float32), margin)
    assert jnp.allclose(loss3, ref3, rtol=2e-2, atol=2e-2), (loss3, ref3)

    print("KERNEL_OK")
</pallas_src>

<mosaic_0001>
module attributes {stable_mosaic.version = 11 : i64} {
  func.func @_pairwise_ranking_kernel(%arg0: i32, %arg1: memref<8x32xf32, #tpu.memory_space<vmem>>, %arg2: memref<8x32xf32, #tpu.memory_space<vmem>>, %arg3: memref<8x32xf32, #tpu.memory_space<vmem>>, %arg4: memref<1x1x1xf32, #tpu.memory_space<vmem>>) attributes {dimension_semantics = [#tpu.dimension_semantics<parallel>], iteration_bounds = array<i64: 1>, scalar_prefetch = 0 : i64, scratch_operands = 0 : i64, tpu.core_type = #tpu.core_type<tc>, window_params = [{transform_indices = @transform_0, window_bounds = array<i64: 8, 32>}, {transform_indices = @transform_1, window_bounds = array<i64: 8, 32>}, {transform_indices = @transform_2, window_bounds = array<i64: 8, 32>}, {transform_indices = @transform_3, window_bounds = array<i64: 1, 1, 1>}]} {
    %c0 = arith.constant 0 : index
    %c0_0 = arith.constant 0 : index
    %0 = vector.load %arg1[%c0, %c0_0] : memref<8x32xf32, #tpu.memory_space<vmem>>, vector<8x32xf32>
    %c0_1 = arith.constant 0 : index
    %c0_2 = arith.constant 0 : index
    %1 = vector.load %arg2[%c0_1, %c0_2] : memref<8x32xf32, #tpu.memory_space<vmem>>, vector<8x32xf32>
    %c0_3 = arith.constant 0 : index
    %c0_4 = arith.constant 0 : index
    %2 = vector.load %arg3[%c0_3, %c0_4] : memref<8x32xf32, #tpu.memory_space<vmem>>, vector<8x32xf32>
    %3 = arith.subf %1, %2 : vector<8x32xf32>
    %4 = arith.mulf %0, %3 : vector<8x32xf32>
    %cst = arith.constant dense<0.000000e+00> : vector<8xf32>
    %5 = vector.multi_reduction <add>, %4, %cst [1] : vector<8x32xf32> to vector<8xf32>
    %6 = vector.shape_cast %5 : vector<8xf32> to vector<8x1xf32>
    %cst_5 = arith.constant 2.000000e-01 : f32
    %7 = vector.broadcast %cst_5 : f32 to vector<8x1xf32>
    %8 = arith.subf %7, %6 : vector<8x1xf32>
    %cst_6 = arith.constant 0.000000e+00 : f32
    %9 = vector.broadcast %cst_6 : f32 to vector<8x1xf32>
    %10 = arith.maximumf %8, %9 : vector<8x1xf32>
    %11 = vector.shape_cast %10 : vector<8x1xf32> to vector<1x8x1xf32>
    %cst_7 = arith.constant dense<0.000000e+00> : vector<1xf32>
    %12 = vector.multi_reduction <add>, %11, %cst_7 [1, 2] : vector<1x8x1xf32> to vector<1xf32>
    %13 = vector.shape_cast %12 : vector<1xf32> to vector<1x1x1xf32>
    %14 = vector.extract %13[0, 0, 0] : f32 from vector<1x1x1xf32>
    %15 = vector.broadcast %14 : f32 to vector<1x1xf32>
    %c0_8 = arith.constant 0 : index
    %c0_9 = arith.constant 0 : index
    %c0_10 = arith.constant 0 : index
    %16 = vector.load %arg4[%c0_8, %c0_9, %c0_10] : memref<1x1x1xf32, #tpu.memory_space<vmem>>, vector<1x1x1xf32>
    %17 = vector.shape_cast %16 : vector<1x1x1xf32> to vector<1x1xf32>
    %18 = vector.shape_cast %15 : vector<1x1xf32> to vector<1x1x1xf32>
    tpu.vector_store %arg4[%c0_8, %c0_9, %c0_10], %18 {strides = array<i32>} : memref<1x1x1xf32, #tpu.memory_space<vmem>>, vector<1x1x1xf32>,
    return
  }
  func.func @transform_0(%arg0: i32) -> (i32, i32) {
    %c0_i32 = arith.constant 0 : i32
    %c0_i32_0 = arith.constant 0 : i32
    return %arg0, %c0_i32 : i32, i32
  }
  func.func @transform_1(%arg0: i32) -> (i32, i32) {
    %c0_i32 = arith.constant 0 : i32
    %c0_i32_0 = arith.constant 0 : i32
    return %arg0, %c0_i32 : i32, i32
  }
  func.func @transform_2(%arg0: i32) -> (i32, i32) {
    %c0_i32 = arith.constant 0 : i32
    %c0_i32_0 = arith.constant 0 : i32
    return %arg0, %c0_i32 : i32, i32
  }
  func.func @transform_3(%arg0: i32) -> (i32, i32, i32) {
    %c0_i32 = arith.constant 0 : i32
    %c0_i32_0 = arith.constant 0 : i32
    %c0_i32_1 = arith.constant 0 : i32
    return %arg0, %c0_i32, %c0_i32_0 : i32, i32, i32
  }
}

</mosaic_0001>

<bundles_post_ra>
// kernel: tpu_custom_call.1
= control target key start
LH: loop header
LB: loop body
LE: loop exit
PB: predicated region body
PF: predicated region fallthrough
CT: control target
= control target key end

     0   :  { %8 = vsyncpa [#allocation3], 0  ;;  %s263_s0 = inlined_call_operand.hbm [shape: f32[8,32], index: 0, kind: input, shape index: {}]   ;;  %s264_s1 = inlined_call_operand.hbm [shape: f32[8,32], index: 1, kind: input, shape index: {}]   ;;  %s265_s2 = inlined_call_operand.hbm [shape: f32[8,32], index: 2, kind: input, shape index: {}]   ;;  %s266_s3 = inlined_call_operand.hbm [shape: f32[1,1,1], index: 3, kind: output, shape index: {}]  }
   0x1   :  { %9 = vsyncpa [#allocation6], 0 }
   0x2   :  { %10 = vsyncpa [#allocation4], 0  ;;  %s191_s12 = smov [#allocation5]   ;;  %s192_s14 = smov [#allocation2]  }
   0x3   :  { %s27_s13 = sshll.u32 %s191_s12, 4  ;;  %s17_s15 = sshll.u32 %s192_s14, 4  ;;  %s28_s13 = int_to_ptr.vmem [resolvable:$true] %s27_s13  ;;  %s18_s15 = int_to_ptr.vmem [resolvable:$true] %s17_s15 }
   0x4   :  { %s97_s18 = scalar_lea.hbm %s264_s1, 128 }
   0x5   :  { %p98_p0 = scmp.ne.s32.totalorder %s264_s1, %s97_s18  ;;  %p101_p1 = scmp.lt.u32.totalorder %s97_s18, %s264_s1 }
   0x7   :  { %p103_p2 = pnand %p101_p1, %p98_p0 }
   0x9   :  { %106 = shalt.err (!%p103_p2)
}
   0xa   :  { %s107_s23 = scalar_lea.vmem %s28_s13, 128  ;;  %p112_p4 = scmp.lt.s32.totalorder %s28_s13, %s28_s13 }
   0xb   :  { %p108_p3 = scmp.ne.s32.totalorder %s28_s13, %s107_s23  ;;  %p113_p5 = scmp.lt.s32.totalorder %s107_s23, %s107_s23 }
   0xd   :  { %p114_p6 = por %p113_p5, %p112_p4 }
   0xf   :  { %p115_p7 = pnand %p114_p6, %p108_p3 }
  0x11   :  { %118 = shalt.err (!%p115_p7)
}
  0x12   :  { %30 = dma.hbm_to_vmem [thread:$0]  %s264_s1, 128, %s28_s13, [#allocation6]  }
  0x13   :  { %s119_s28 = scalar_lea.hbm %s263_s0, 128 }
  0x14   :  { %p120_p8 = scmp.ne.s32.totalorder %s263_s0, %s119_s28  ;;  %p123_p9 = scmp.lt.u32.totalorder %s119_s28, %s263_s0 }
  0x16   :  { %p125_p10 = pnand %p123_p9, %p120_p8 }
  0x18   :  { %128 = shalt.err (!%p125_p10)
}
  0x19   :  { %s129_s6 = scalar_lea.vmem %s18_s15, 128  ;;  %p134_p12 = scmp.lt.s32.totalorder %s18_s15, %s18_s15 }
  0x1a   :  { %p130_p11 = scmp.ne.s32.totalorder %s18_s15, %s129_s6  ;;  %p135_p13 = scmp.lt.s32.totalorder %s129_s6, %s129_s6 }
  0x1c   :  { %p136_p0 = por %p135_p13, %p134_p12 }
  0x1e   :  { %p137_p1 = pnand %p136_p0, %p130_p11 }
  0x20   :  { %140 = shalt.err (!%p137_p1)
}
  0x21   :  { %20 = dma.hbm_to_vmem [thread:$0]  %s263_s0, 128, %s18_s15, [#allocation3]  }
  0x22   :  { %s193_s8 = smov [#allocation7]   ;;  %s141_s12 = scalar_lea.hbm %s265_s2, 128 }
  0x23   :  { %s37_s9 = sshll.u32 %s193_s8, 4  ;;  %p142_p2 = scmp.ne.s32.totalorder %s265_s2, %s141_s12  ;;  %s38_s9 = int_to_ptr.vmem [resolvable:$true] %s37_s9 }
  0x24   :  { %p145_p3 = scmp.lt.u32.totalorder %s141_s12, %s265_s2 }
  0x26   :  { %p147_p4 = pnand %p145_p3, %p142_p2 }
  0x28   :  { %150 = shalt.err (!%p147_p4)
}
  0x29   :  { %s151_s18 = scalar_lea.vmem %s38_s9, 128  ;;  %p156_p6 = scmp.lt.s32.totalorder %s38_s9, %s38_s9 }
  0x2a   :  { %p152_p5 = scmp.ne.s32.totalorder %s38_s9, %s151_s18  ;;  %p157_p7 = scmp.lt.s32.totalorder %s151_s18, %s151_s18 }
  0x2c   :  { %p158_p8 = por %p157_p7, %p156_p6 }
  0x2e   :  { %p159_p9 = pnand %p158_p8, %p152_p5 }
  0x30   :  { %162 = shalt.err (!%p159_p9)
}
  0x31   :  { %40 = dma.hbm_to_vmem [thread:$0]  %s265_s2, 128, %s38_s9, [#allocation6]  }
  0x32   :  { %185 = dma.done.wait [#allocation3], 128  }
  0x33   :  { %186 = vsyncadd [#allocation3], 4294967168 }
  0x34   :  { %187 = dma.done.wait [#allocation6], 256  }
  0x35   :  { %188 = vsyncadd [#allocation6], 4294967040  ;;  %v50_v0 = vld [vmem:[#allocation2] sm:$0xff]  ;;  %v51_v1 = vld [vmem:[#allocation5] sm:$0xff]  ;;  %vm55_vm0 = vcmask 261120   ;;  %vm61_vm1 = vcmask 7168  }
  0x36   :  { %v52_v2 = vld [vmem:[#allocation7] sm:$0xff]  ;;  %s194_s2 = smov [#allocation8]   ;;  %vm73_vm2 = vcmask 0  }
  0x37   :  { %v53_v3 = vsub.f32 %v51_v1, %v52_v2  ;;  %s81_s19 = sshll.u32 %s194_s2, 4  ;;  %s82_s19 = int_to_ptr.vmem [resolvable:$true] %s81_s19 }
  0x38   :  { %s163_s21 = scalar_lea.vmem %s82_s19, 16  ;;  %s167_s22 = scalar_lea.vmem %s82_s19, 32 }
  0x39   :  { %v54_v4 = vmul.f32 %v53_v3, %v50_v0  ;;  %p164_p10 = scmp.ne.s32.totalorder %s82_s19, %s163_s21  ;;  %p168_p11 = scmp.lt.s32.totalorder %s82_s19, %s82_s19 }
  0x3a   :  { %p169_p12 = scmp.lt.s32.totalorder %s167_s22, %s163_s21 }
  0x3b   :  { %v56_v5 = vsel %vm55_vm0, %v54_v4, 0.0 }
  0x3c   :  { %57 = vadd.xlane.f32.xlu0 %v56_v5  ;;  %p170_p13 = por %p169_p12, %p168_p11 }
  0x3e   :  { %p171_p0 = pnand %p170_p13, %p164_p10 }
  0xc9   :  { %v58_v6 = vpop.xlane.xlu0 %57 }
  0xca   :  { %v59_v7 = vsub.f32 0.2, %v58_v6 }
  0xcc   :  { %v60_v8 = vmax.f32 %v59_v7, 0.0 }
  0xce   :  { %v62_v9 = vsel %vm61_vm1, %v60_v8, 0.0 }
  0xcf   :  { %63 = vadd.xlane.f32.xlu0 %v62_v9 }
 0x15c   :  { %v64_v10 = vpop.xlane.xlu0 %63 }
 0x15d   :  { %v65_v11 = vrot.slane %v64_v10, 4 }
 0x15f   :  { %v66_v12 = vadd.f32 %v65_v11, %v64_v10 }
 0x161   :  { %v67_v13 = vrot.slane %v66_v12, 2 }
 0x163   :  { %v68_v14 = vadd.f32 %v67_v13, %v66_v12 }
 0x165   :  { %v69_v15 = vrot.slane %v68_v14, 1 }
 0x167   :  { %v70_v16 = vadd.f32 %v69_v15, %v68_v14 }
 0x169   :  { %91 = vpush %v70_v16 }
 0x19a   :  { %s92_s20 = spop %91 }
 0x19b   :  { %v72_v17 = vstv %s92_s20 }
 0x19c   :  { %74 = vst.msk [vmem:[#allocation8] sm:$0x1] %vm73_vm2, %v72_v17 }
 0x19d   :  { %174 = shalt.err (!%p171_p0)
}
 0x19e   :  { %s175_s25 = scalar_lea.hbm %s266_s3, 16 }
 0x19f   :  { %p176_p1 = scmp.ne.s32.totalorder %s266_s3, %s175_s25  ;;  %p179_p2 = scmp.lt.u32.totalorder %s175_s25, %s266_s3 }
 0x1a1   :  { %p181_p3 = pnand %p179_p2, %p176_p1 }
 0x1a3   :  { %184 = shalt.err (!%p181_p3)
}
 0x1a4   :  { %84 = dma.vmem_to_hbm [thread:$0]  %s82_s19, 16, %s266_s3, [#allocation4]  }
 0x1a5   :  { %189 = dma.done.wait [#allocation4], 16  }
 0x1a6   :  { %190 = vsyncadd [#allocation4], 4294967280 }
 0x1a7   :  { %88 = vsyncpa [#allocation3], 1 }
 0x1a8   :  { %89 = vsyncpa [#allocation6], 1 }
 0x1a9   :  { %90 = vsyncpa [#allocation4], 1 }

</bundles_post_ra>
